<compile_context>
chip_gen: v6e
topology: v6e:2x2x1
jax: 0.10.0
libtpu: 0.0.40
codegen_flags: <defaults>
</compile_context>

<pallas_src>
import math

import jax
import jax.numpy as jnp
from jax.experimental import pallas as pl
from jax.experimental.pallas import tpu as pltpu


def _gelu_exact(v):
    # nn.GELU() default = exact erf formulation: 0.5*x*(1+erf(x/sqrt(2)))
    return 0.5 * v * (1.0 + jax.lax.erf(v * (1.0 / math.sqrt(2.0))))


def _risk_head_kernel(x_ref, emb_ref, mask_ref, w1x_ref, w1e_ref, b1_ref,
                      w2_ref, b2_ref, out_ref):
    # GELU only over the true x columns (the embedding is not activated in the
    # reference module); erf computed in f32 on the EUP.
    gx = _gelu_exact(x_ref[...].astype(jnp.float32)).astype(jnp.bfloat16)

    # Fused first linear over the (virtual) concat([gelu(x), emb]):
    # two dense bf16 MXU GEMMs with f32 accumulation, summed.  Dropout is the
    # inference-mode identity.
    h = (jnp.dot(gx, w1x_ref[...], preferred_element_type=jnp.float32)
         + jnp.dot(emb_ref[...], w1e_ref[...], preferred_element_type=jnp.float32)
         + b1_ref[...])
    h = _gelu_exact(h)

    logits = jnp.dot(h.astype(jnp.bfloat16), w2_ref[...],
                     preferred_element_type=jnp.float32) + b2_ref[...]

    # masked_fill_(mask, -10000.0); lane-dense 128-wide unmasked f32 store.
    out_ref[...] = jnp.where(mask_ref[...] != 0, jnp.float32(-10000.0), logits)


def _round_up(n, m):
    return (n + m - 1) // m * m


def _choose_batch_tile(B, block_b):
    # mask travels as int8 -> keep the batch tile a multiple of 32 (min int8
    # sublane tile).  Whole batch in one step when it fits the tile.
    b32 = _round_up(B, 32)
    bb = min(block_b, b32)
    # v7x has 2 TensorCores: prefer >= 2 grid steps on the "parallel" batch
    # axis whenever the batch is big enough to split into legal tiles
    # (no-op perf-wise on single-TC v5e/v6e).
    if b32 // bb < 2 and b32 >= 64:
        bb = _round_up(pl.cdiv(b32, 2), 32)
    return bb


def _pick_vmem_limit():
    # Per-generation VMEM budget: ~48 MiB on v7x (64 MiB physical), up to
    # 96 MiB on v5e/v6e (128 MiB physical); always leave Mosaic scratch room.
    try:
        cap = pltpu.get_tpu_info().vmem_capacity_bytes
    except Exception:
        cap = 64 * 1024 * 1024
    return int(max(32 * 1024 * 1024,
                   min(cap - 16 * 1024 * 1024, 96 * 1024 * 1024)))


def risk_head_forward(x, disease_code, mask, emb_table, w1, b1, w2, b2,
                      *, block_b=512):
    B, F = x.shape
    E = emb_table.shape[1]
    H = w1.shape[1]
    C = w2.shape[1]

    # Glue: embedding gather stays in the wrapper (data-dependent row gather).
    # TODO(synk): dropout treated as inference-mode identity; torch autocast
    # is mapped to bf16 MXU operands with f32 accumulation.
    emb = emb_table[disease_code]                                   # [B, E]

    Hp = _round_up(H, 128)
    Cp = _round_up(C, 128)
    bb = _choose_batch_tile(B, block_b)
    Bp = _round_up(B, bb)

    # Activations in bf16; only the batch dim is padded — K stays unpadded
    # because the x / emb blocks are full-extent in their last dim.
    x_p = jnp.zeros((Bp, F), jnp.bfloat16).at[:B].set(x.astype(jnp.bfloat16))
    emb_p = jnp.zeros((Bp, E), jnp.bfloat16).at[:B].set(emb.astype(jnp.bfloat16))
    mask_p = jnp.zeros((Bp, Cp), jnp.int8).at[:B, :C].set(mask.astype(jnp.int8))

    # Split W1 along K so the concat never materializes; pad lane dims to 128
    # for dense MXU tiles and an unmasked output store path.
    w1_bf = w1.astype(jnp.bfloat16)
    w1x_p = jnp.zeros((F, Hp), jnp.bfloat16).at[:, :H].set(w1_bf[:F])
    w1e_p = jnp.zeros((E, Hp), jnp.bfloat16).at[:, :H].set(w1_bf[F:F + E])
    b1_p = jnp.zeros((1, Hp), jnp.float32).at[0, :H].set(b1)
    w2_p = jnp.zeros((Hp, Cp), jnp.bfloat16).at[:H, :C].set(w2.astype(jnp.bfloat16))
    b2_p = jnp.zeros((1, Cp), jnp.float32).at[0, :C].set(b2)

    cost = pl.CostEstimate(
        flops=int(2 * B * ((F + E) * H + H * C)),
        transcendentals=int(B * (F + H)),
        bytes_accessed=int(x_p.size * 2 + emb_p.size * 2 + mask_p.size
                           + (w1x_p.size + w1e_p.size + w2_p.size) * 2
                           + (b1_p.size + b2_p.size) * 4 + Bp * Cp * 4),
    )

    # Weight/bias specs have constant index_maps -> resident across the batch
    # grid.  At the module's real sizes they total <1.5 MiB, so the default
    # double-buffering is kept (pl.Buffered(1) would reclaim a negligible
    # amount of VMEM and is not worth the portability risk).
    out_p = pl.pallas_call(
        _risk_head_kernel,
        out_shape=jax.ShapeDtypeStruct((Bp, Cp), jnp.float32),
        grid_spec=pltpu.PrefetchScalarGridSpec(
            num_scalar_prefetch=0,
            grid=(Bp // bb,),
            in_specs=[
                pl.BlockSpec((bb, F), lambda i: (i, 0)),    # x tile (bf16)
                pl.BlockSpec((bb, E), lambda i: (i, 0)),    # emb tile (bf16)
                pl.BlockSpec((bb, Cp), lambda i: (i, 0)),   # mask tile (int8)
                pl.BlockSpec((F, Hp), lambda i: (0, 0)),    # W1[:F]  (resident)
                pl.BlockSpec((E, Hp), lambda i: (0, 0)),    # W1[F:]  (resident)
                pl.BlockSpec((1, Hp), lambda i: (0, 0)),    # b1
                pl.BlockSpec((Hp, Cp), lambda i: (0, 0)),   # W2      (resident)
                pl.BlockSpec((1, Cp), lambda i: (0, 0)),    # b2
            ],
            out_specs=pl.BlockSpec((bb, Cp), lambda i: (i, 0)),
        ),
        compiler_params=pltpu.CompilerParams(
            dimension_semantics=("parallel",),
            vmem_limit_bytes=_pick_vmem_limit(),
        ),
        cost_estimate=cost,
    )(x_p, emb_p, mask_p, w1x_p, w1e_p, b1_p, w2_p, b2_p)

    return out_p[:B, :C]


def _reference(x, emb, mask, w1, b1, w2, b2):
    gx = _gelu_exact(x)
    concat = jnp.concatenate([gx, emb], axis=1)
    h = _gelu_exact(concat @ w1 + b1)
    logits = h @ w2 + b2
    return jnp.where(mask, jnp.float32(-10000.0), logits)


if __name__ == "__main__":
    # Small synthetic shapes consistent with the module's forward.  B=80 spans
    # two grid steps, exercising the multi-step "parallel" batch axis.
    B = 80          # batch
    F = 32          # num_base_features (1000 in the original, shrunk)
    E = 8           # embedding_dim
    H = 32          # hidden_feature
    C = 4           # num_classes
    NUM_DISEASES = 16   # stands in for len(disease_encoding)

    key = jax.random.PRNGKey(0)
    ks = jax.random.split(key, 8)

    # inputs
    x = jax.random.normal(ks[0], (B, F), jnp.float32)
    disease_code = jax.random.randint(ks[1], (B,), 0, NUM_DISEASES)
    mask = jax.random.bernoulli(ks[2], 0.25, (B, C))

    # deterministic parameters (module __init__ shapes)
    emb_table = jax.random.normal(ks[3], (NUM_DISEASES, E), jnp.float32) * 0.1
    w1 = jax.random.normal(ks[4], (F + E, H), jnp.float32) * 0.05
    b1 = jax.random.normal(ks[5], (H,), jnp.float32) * 0.05
    w2 = jax.random.normal(ks[6], (H, C), jnp.float32) * 0.05
    b2 = jax.random.normal(ks[7], (C,), jnp.float32) * 0.05

    out = risk_head_forward(x, disease_code, mask, emb_table, w1, b1, w2, b2)
    out = jax.block_until_ready(out)

    ref = _reference(x, emb_table[disease_code], mask, w1, b1, w2, b2)
    assert out.shape == (B, C)
    # bf16 activations/weights on the MXU (autocast-style) -> relaxed tolerance
    assert jnp.allclose(out, ref, atol=5e-2, rtol=5e-2)
    # masked positions are filled with exactly -10000.0
    assert bool(jnp.all(jnp.where(mask, out == -10000.0, True)))

    print("KERNEL_OK")
</pallas_src>

<mosaic_0001>
module attributes {stable_mosaic.version = 11 : i64} {
  func.func @_risk_head_kernel(%arg0: i32, %arg1: memref<64x32xbf16, #tpu.memory_space<vmem>>, %arg2: memref<64x8xbf16, #tpu.memory_space<vmem>>, %arg3: memref<64x128xi8, #tpu.memory_space<vmem>>, %arg4: memref<32x128xbf16, #tpu.memory_space<vmem>>, %arg5: memref<8x128xbf16, #tpu.memory_space<vmem>>, %arg6: memref<1x128xf32, #tpu.memory_space<vmem>>, %arg7: memref<128x128xbf16, #tpu.memory_space<vmem>>, %arg8: memref<1x128xf32, #tpu.memory_space<vmem>>, %arg9: memref<64x128xf32, #tpu.memory_space<vmem>>) attributes {dimension_semantics = [#tpu.dimension_semantics<parallel>], iteration_bounds = array<i64: 2>, scalar_prefetch = 0 : i64, scratch_operands = 0 : i64, tpu.core_type = #tpu.core_type<tc>, window_params = [{transform_indices = @transform_0, window_bounds = array<i64: 64, 32>}, {transform_indices = @transform_1, window_bounds = array<i64: 64, 8>}, {transform_indices = @transform_2, window_bounds = array<i64: 64, 128>}, {pipeline_mode = #tpu.pipeline_mode<synchronous>, transform_indices = @transform_3, window_bounds = array<i64: 32, 128>}, {pipeline_mode = #tpu.pipeline_mode<synchronous>, transform_indices = @transform_4, window_bounds = array<i64: 8, 128>}, {pipeline_mode = #tpu.pipeline_mode<synchronous>, transform_indices = @transform_5, window_bounds = array<i64: 1, 128>}, {pipeline_mode = #tpu.pipeline_mode<synchronous>, transform_indices = @transform_6, window_bounds = array<i64: 128, 128>}, {pipeline_mode = #tpu.pipeline_mode<synchronous>, transform_indices = @transform_7, window_bounds = array<i64: 1, 128>}, {transform_indices = @transform_8, window_bounds = array<i64: 64, 128>}]} {
    %c0 = arith.constant 0 : index
    %c0_0 = arith.constant 0 : index
    %0 = vector.load %arg1[%c0, %c0_0] : memref<64x32xbf16, #tpu.memory_space<vmem>>, vector<64x32xbf16>
    %1 = arith.extf %0 : vector<64x32xbf16> to vector<64x32xf32>
    %cst = arith.constant 5.000000e-01 : f32
    %2 = vector.broadcast %cst : f32 to vector<64x32xf32>
    %3 = arith.mulf %2, %1 : vector<64x32xf32>
    %cst_1 = arith.constant 0.707106769 : f32
    %4 = vector.broadcast %cst_1 : f32 to vector<64x32xf32>
    %5 = arith.mulf %1, %4 : vector<64x32xf32>
    %6 = math.erf %5 : vector<64x32xf32>
    %cst_2 = arith.constant 1.000000e+00 : f32
    %7 = vector.broadcast %cst_2 : f32 to vector<64x32xf32>
    %8 = arith.addf %7, %6 : vector<64x32xf32>
    %9 = arith.mulf %3, %8 : vector<64x32xf32>
    %10 = arith.truncf %9 : vector<64x32xf32> to vector<64x32xbf16>
    %c0_3 = arith.constant 0 : index
    %c0_4 = arith.constant 0 : index
    %11 = vector.load %arg4[%c0_3, %c0_4] : memref<32x128xbf16, #tpu.memory_space<vmem>>, vector<32x128xbf16>
    %cst_5 = arith.constant dense<0.000000e+00> : vector<64x128xf32>
    %12 = tpu.matmul %10, %11, %cst_5 {dimension_numbers = #tpu.dot_dimension_numbers<[1], [0], [0], [1], [0, 0, 1, 1], [], []>} : vector<64x32xbf16>, vector<32x128xbf16>, vector<64x128xf32> -> vector<64x128xf32>
    %c0_6 = arith.constant 0 : index
    %c0_7 = arith.constant 0 : index
    %13 = vector.load %arg2[%c0_6, %c0_7] : memref<64x8xbf16, #tpu.memory_space<vmem>>, vector<64x8xbf16>
    %c0_8 = arith.constant 0 : index
    %c0_9 = arith.constant 0 : index
    %14 = vector.load %arg5[%c0_8, %c0_9] : memref<8x128xbf16, #tpu.memory_space<vmem>>, vector<8x128xbf16>
    %cst_10 = arith.constant dense<0.000000e+00> : vector<64x128xf32>
    %15 = tpu.matmul %13, %14, %cst_10 {dimension_numbers = #tpu.dot_dimension_numbers<[1], [0], [0], [1], [0, 0, 1, 1], [], []>} : vector<64x8xbf16>, vector<8x128xbf16>, vector<64x128xf32> -> vector<64x128xf32>
    %16 = arith.addf %12, %15 : vector<64x128xf32>
    %c0_11 = arith.constant 0 : index
    %c0_12 = arith.constant 0 : index
    %17 = vector.load %arg6[%c0_11, %c0_12] : memref<1x128xf32, #tpu.memory_space<vmem>>, vector<1x128xf32>
    %18 = vector.broadcast %17 : vector<1x128xf32> to vector<64x128xf32>
    %19 = arith.addf %16, %18 : vector<64x128xf32>
    %cst_13 = arith.constant 5.000000e-01 : f32
    %20 = vector.broadcast %cst_13 : f32 to vector<64x128xf32>
    %21 = arith.mulf %20, %19 : vector<64x128xf32>
    %cst_14 = arith.constant 0.707106769 : f32
    %22 = vector.broadcast %cst_14 : f32 to vector<64x128xf32>
    %23 = arith.mulf %19, %22 : vector<64x128xf32>
    %24 = math.erf %23 : vector<64x128xf32>
    %cst_15 = arith.constant 1.000000e+00 : f32
    %25 = vector.broadcast %cst_15 : f32 to vector<64x128xf32>
    %26 = arith.addf %25, %24 : vector<64x128xf32>
    %27 = arith.mulf %21, %26 : vector<64x128xf32>
    %28 = arith.truncf %27 : vector<64x128xf32> to vector<64x128xbf16>
    %c0_16 = arith.constant 0 : index
    %c0_17 = arith.constant 0 : index
    %29 = vector.load %arg7[%c0_16, %c0_17] : memref<128x128xbf16, #tpu.memory_space<vmem>>, vector<128x128xbf16>
    %cst_18 = arith.constant dense<0.000000e+00> : vector<64x128xf32>
    %30 = tpu.matmul %28, %29, %cst_18 {dimension_numbers = #tpu.dot_dimension_numbers<[1], [0], [0], [1], [0, 0, 1, 1], [], []>} : vector<64x128xbf16>, vector<128x128xbf16>, vector<64x128xf32> -> vector<64x128xf32>
    %c0_19 = arith.constant 0 : index
    %c0_20 = arith.constant 0 : index
    %31 = vector.load %arg8[%c0_19, %c0_20] : memref<1x128xf32, #tpu.memory_space<vmem>>, vector<1x128xf32>
    %32 = vector.broadcast %31 : vector<1x128xf32> to vector<64x128xf32>
    %33 = arith.addf %30, %32 : vector<64x128xf32>
    %c0_21 = arith.constant 0 : index
    %c0_22 = arith.constant 0 : index
    %34 = vector.load %arg3[%c0_21, %c0_22] : memref<64x128xi8, #tpu.memory_space<vmem>>, vector<64x128xi8>
    %c0_i8 = arith.constant 0 : i8
    %35 = vector.broadcast %c0_i8 : i8 to vector<64x128xi8>
    %36 = arith.cmpi ne, %34, %35 : vector<64x128xi8>
    %cst_23 = arith.constant -1.000000e+04 : f32
    %37 = vector.broadcast %cst_23 : f32 to vector<64x128xf32>
    %38 = arith.select %36, %37, %33 : vector<64x128xi1>, vector<64x128xf32>
    %c0_24 = arith.constant 0 : index
    %c0_25 = arith.constant 0 : index
    %39 = vector.load %arg9[%c0_24, %c0_25] : memref<64x128xf32, #tpu.memory_space<vmem>>, vector<64x128xf32>
    tpu.vector_store %arg9[%c0_24, %c0_25], %38 {strides = array<i32>} : memref<64x128xf32, #tpu.memory_space<vmem>>, vector<64x128xf32>,
    return
  }
  func.func @transform_0(%arg0: i32) -> (i32, i32) {
    %c0_i32 = arith.constant 0 : i32
    %c0_i32_0 = arith.constant 0 : i32
    return %arg0, %c0_i32 : i32, i32
  }
  func.func @transform_1(%arg0: i32) -> (i32, i32) {
    %c0_i32 = arith.constant 0 : i32
    %c0_i32_0 = arith.constant 0 : i32
    return %arg0, %c0_i32 : i32, i32
  }
  func.func @transform_2(%arg0: i32) -> (i32, i32) {
    %c0_i32 = arith.constant 0 : i32
    %c0_i32_0 = arith.constant 0 : i32
    return %arg0, %c0_i32 : i32, i32
  }
  func.func @transform_3(%arg0: i32) -> (i32, i32) {
    %c0_i32 = arith.constant 0 : i32
    %c0_i32_0 = arith.constant 0 : i32
    %c0_i32_1 = arith.constant 0 : i32
    return %c0_i32, %c0_i32_0 : i32, i32
  }
  func.func @transform_4(%arg0: i32) -> (i32, i32) {
    %c0_i32 = arith.constant 0 : i32
    %c0_i32_0 = arith.constant 0 : i32
    %c0_i32_1 = arith.constant 0 : i32
    return %c0_i32, %c0_i32_0 : i32, i32
  }
  func.func @transform_5(%arg0: i32) -> (i32, i32) {
    %c0_i32 = arith.constant 0 : i32
    %c0_i32_0 = arith.constant 0 : i32
    %c0_i32_1 = arith.constant 0 : i32
    return %c0_i32, %c0_i32_0 : i32, i32
  }
  func.func @transform_6(%arg0: i32) -> (i32, i32) {
    %c0_i32 = arith.constant 0 : i32
    %c0_i32_0 = arith.constant 0 : i32
    %c0_i32_1 = arith.constant 0 : i32
    return %c0_i32, %c0_i32_0 : i32, i32
  }
  func.func @transform_7(%arg0: i32) -> (i32, i32) {
    %c0_i32 = arith.constant 0 : i32
    %c0_i32_0 = arith.constant 0 : i32
    %c0_i32_1 = arith.constant 0 : i32
    return %c0_i32, %c0_i32_0 : i32, i32
  }
  func.func @transform_8(%arg0: i32) -> (i32, i32) {
    %c0_i32 = arith.constant 0 : i32
    %c0_i32_0 = arith.constant 0 : i32
    return %arg0, %c0_i32 : i32, i32
  }
}

</mosaic_0001>

<bundles_post_ra>
// kernel: tpu_custom_call.1
= control target key start
LH: loop header
LB: loop body
LE: loop exit
PB: predicated region body
PF: predicated region fallthrough
CT: control target
= control target key end

     0   :  { %13 = vsyncpa [#allocation3], 0  ;;  %s1501_s0 = inlined_call_operand.vmem [shape: bf16[128,32], index: 0, kind: input, shape index: {}]   ;;  %s1502_s1 = inlined_call_operand.vmem [shape: bf16[128,8], index: 1, kind: input, shape index: {}]   ;;  %s1503_s2 = inlined_call_operand.vmem [shape: s8[128,128], index: 2, kind: input, shape index: {}]   ;;  %s1504_s3 = inlined_call_operand.vmem [shape: bf16[32,128], index: 3, kind: input, shape index: {}]   ;;  %s1505_s4 = inlined_call_operand.vmem [shape: bf16[8,128], index: 4, kind: input, shape index: {}]   ;;  %s1506_s5 = inlined_call_operand.vmem [shape: f32[1,128], index: 5, kind: input, shape index: {}]   ;;  %s1507_s6 = inlined_call_operand.vmem [shape: bf16[128,128], index: 6, kind: input, shape index: {}]   ;;  %s1508_s7 = inlined_call_operand.vmem [shape: f32[1,128], index: 7, kind: input, shape index: {}]   ;;  %s1509_s8 = inlined_call_operand.hbm [shape: f32[128,128], index: 8, kind: output, shape index: {}]  }
   0x1   :  { %15 = vsyncpa [#allocation3 + $0x1], 0  ;;  %s1321_s27 = smov 0   ;;  %s1323_s28 = smov 0  }
   0x2   :  { %s1325_s29 = smov 0   ;;  %s1327_s30 = smov 0  }
   0x3 LB: > { %s1342_s9 = sadd.s32 4294967295, %s1270_s30   ;;  %s992_s10 = sadd.s32 4294967294, %s1270_s30   ;;  %s1270_s30 = sphi %s1327_s30, %s1515_s30   ;;  %s1266_s29 = sphi %s1325_s29, %s1514_s29   ;;  %s1262_s28 = sphi %s1323_s28, %s1513_s28   ;;  %s1258_s27 = sphi %s1321_s27, %s1512_s27  }
   0x4   : > { %s1346_s11 = sadd.s32 1, %s1270_s30   ;;  %s211_s12 = sadd.s32 1, %s1266_s29 }
   0x5   : > { %s208_s13 = ssub.s32 %s1270_s30, %s1346_s11  ;;  %p221_p0 = scmp.ne.s32.totalorder %s1266_s29, %s1262_s28 }
   0x6   : > { %p209_p1 = scmp.eq.s32.totalorder %s208_s13, 0  ;;  %p222_p2 = scmp.eq.s32.totalorder %s1342_s9, 1 }
   0x7   : > { %p227_p3 = scmp.ne.s32.totalorder %s1262_s28, %s1258_s27  ;;  %p228_p4 = scmp.eq.s32.totalorder %s992_s10, 1 }
   0x8   : > { %s1357_s14 = scalar_select %p209_p1, %s1266_s29, %s211_s12  }
   0x9   : > { %p1359_p5 = por %p222_p2, %p221_p0  ;;  %p1363_p6 = por %p228_p4, %p227_p3 }
   0xa   : > { %p995_p7 = scmp.ge.s32.totalorder %s1270_s30, 1  ;;  %p288_p8 = scmp.lt.s32.totalorder %s1270_s30, 3 }
   0xc   : > { %p289_p9 = pnand %p995_p7, %p288_p8 }
   0xd   : > { %s997_s19 = sshll.u32 (!%p289_p9), %s1342_s9, 3  ;;  %s1001_s23 = sshll.u32 (!%p289_p9), %s1342_s9, 1 }
   0xe   : > { %292 = sbr.rel (%p289_p9) target bundleno = 501 (0x1f5), region = 52  ;;  %p333_p10 = scmp.lt.s32.totalorder (!%p289_p9), %s997_s19, 15 }
   0xf   : > { %p345_p11 = scmp.lt.s32.totalorder (!%p289_p9), %s1001_s23, 3  ;;  %s329_s12 = sand.u32 (!%p289_p9), 1, %s1262_s28  }
  0x10   : > { %s996_s13 = sshll.u32 (!%p289_p9), %s329_s12, 6  ;;  %s1032_s20 = sshll.u32 (!%p289_p9), %s1342_s9, 10 }
  0x11   : > { %s1461_s9 = scalar_lea.sflag (!%p289_p9), [#allocation3], %s329_s12  ;;  %s1273_s26 = smov (!%p289_p9), [#allocation2]  }
  0x13   : > { %v426_v0 = vld [vmem:[%s1505_s4] sm:$0xf]  ;;  %vm460_vm0 = vcmask 1043456   ;;  %v1166_v1 = vld [vmem:[%s1504_s3 + $0x8] sm:$0xff]   ;;  %s1517_s19 = smov (!%p333_p10, %s997_s19), 15  ;;  %vm447_vm1 = vcmask 64512  }
  0x14   : > { %1121 = vmatprep.subr.msk.bf16.mxu1 %vm460_vm0, %v426_v0  ;;  %v462_v2 = vsel %vm460_vm0, %v426_v0, 0  ;;  %s998_s22 = sshll.u32 %s1517_s19, 2  ;;  %v1169_v3 = vld [vmem:[%s1504_s3] sm:$0xff]   ;;  %vm541_vm2 = vcmask 261120   ;;  %v1170_v0 = vld [vmem:[%s1507_s6 + $0x38] sm:$0xff]   ;;  %s1519_s23 = smov (!%p345_p11, %s1001_s23), 3 }
  0x15   : > { %1076 = vmatpush3.bf16.msra.mxu1 %v462_v2  ;;  %s342_s25 = scalar_lea.vmem %s1502_s1, %s998_s22  ;;  %s336_s17 = scalar_lea.vmem %s1501_s0, %s998_s22  ;;  %1097 = vmatprep.subr.bf16.mxu0 %v1170_v0  ;;  %v1172_v2 = vld [vmem:[%s1507_s6 + $0x28] sm:$0xff]  }
  0x16   : > { %1085 = vmatprep.subr.bf16.mxu1 %v1166_v1  ;;  %v1164_v4 = vld [vmem:[%s342_s25] sm:$0xff]   ;;  %v1165_v5 = vld [vmem:[%s342_s25 + $0x8] sm:$0xff]   ;;  %v1167_v6 = vld [vmem:[%s342_s25 + $0x10] sm:$0xff]   ;;  %1098 = vmatpush3.bf16.msra.mxu0 %v1170_v0  ;;  %s1002_s24 = sshll.u32 %s1519_s23, 3  ;;  %s1438_s19 = scalar_lea.vmem [#allocation2], %s996_s13 }
  0x17   : > { %1077 = vmatprep.mubr.msk.bf16.mxu1 %vm447_vm1, %v1164_v4  ;;  %v1034_v7 = vld [vmem:[%s336_s17] sm:$0xff]   ;;  %v1049_v8 = vld [vmem:[%s336_s17 + $0x8] sm:$0xff]   ;;  %v1050_v9 = vld [vmem:[%s336_s17 + $0x10] sm:$0xff]   ;;  %s348_s10 = scalar_lea.vmem %s1503_s2, %s1002_s24  ;;  %s906_s21 = sshll.u32 %s1438_s19, 4  ;;  %s1455_s21 = int_to_ptr.vmem [resolvable:$true] %s906_s21 }
  0x18   : > { %1078 = vmatmul.mubr.msk.bf16.vlgmr.msra.gmra.mxu1 %vm447_vm1, %v1165_v5  ;;  %v1035_v10 = vunpack.c.l.bf16 %v1034_v7  ;;  %v1036_v11 = vunpack.c.h.bf16 %v1034_v7  ;;  %v1039_v12 = vunpack.c.l.bf16 %v1049_v8  ;;  %v1040_v13 = vunpack.c.h.bf16 %v1049_v8  ;;  %v1051_v14 = vld [vmem:[%s336_s17 + $0x18] sm:$0xff]   ;;  %v1175_v5 = vld [vmem:[%s1507_s6 + $0x10] sm:$0xff]   ;;  %v1177_v7 = vld [vmem:[%s1507_s6] sm:$0xff]   ;;  %s1453_s24 = scalar_lea.hbm %s1509_s8, %s1032_s20 }
  0x19   : > { %1086 = vmatpush3.bf16.msra.mxu1 %v1166_v1  ;;  %1081 = vmatprep.mubr.msk.bf16.mxu1 %vm447_vm1, %v1167_v6  ;;  %v1043_v15 = vunpack.c.l.bf16 %v1050_v9  ;;  %v1044_v16 = vunpack.c.h.bf16 %v1050_v9  ;;  %v1168_v17 = vld [vmem:[%s342_s25 + $0x18] sm:$0xff]   ;;  %v1047_v20 = vunpack.c.l.bf16 %v1051_v14  ;;  %v1048_v23 = vunpack.c.h.bf16 %v1051_v14  ;;  %v1171_v1 = vld [vmem:[%s1507_s6 + $0x30] sm:$0xff]   ;;  %v1176_v6 = vld [vmem:[%s1507_s6 + $0x8] sm:$0xff]   ;;  %s1210_s25 = scalar_lea.vmem %s1455_s21, 1024 }
  0x1a   : > { %1087 = vmatprep.subr.bf16.mxu1 %v1169_v3  ;;  %v378_v18 = vmul.f32 0.70710677, %v1035_v10  ;;  %v379_v19 = vmul.f32 0.70710677, %v1036_v11  ;;  %v380_v21 = vmul.f32 0.70710677, %v1039_v12  ;;  %1099 = vmatprep.subr.bf16.mxu0 %v1171_v1  ;;  %p1211_p12 = scmp.ne.s32.totalorder %s1455_s21, %s1210_s25 }
  0x1b   : > { %v381_v22 = vmul.f32 0.70710677, %v1040_v13  ;;  %v382_v24 = vmul.f32 0.70710677, %v1043_v15  ;;  %v383_v25 = vmul.f32 0.70710677, %v1044_v16  ;;  %1100 = vmatpush3.bf16.msra.mxu0 %v1171_v1 }
  0x1c   : > { %1178 = verf.f32 %v378_v18  ;;  %v384_v26 = vmul.f32 0.70710677, %v1047_v20  ;;  %v385_v27 = vmul.f32 0.70710677, %v1048_v23  ;;  %v370_v28 = vmul.f32 0.5, %v1035_v10  ;;  %1101 = vmatprep.subr.bf16.mxu0 %v1172_v2  ;;  %v1174_v4 = vld [vmem:[%s1507_s6 + $0x18] sm:$0xff]   ;;  %p1212_p13 = pnand %p1211_p12, %p1359_p5 }
  0x1d   : > { %1088 = vmatpush3.bf16.msra.mxu1 %v1169_v3  ;;  %1180 = verf.f32 %v379_v19  ;;  %v371_v30 = vmul.f32 0.5, %v1036_v11  ;;  %v372_v33 = vmul.f32 0.5, %v1039_v12  ;;  %v373_v36 = vmul.f32 0.5, %v1040_v13  ;;  %v1173_v3 = vld [vmem:[%s1507_s6 + $0x20] sm:$0xff]  }
  0x1e   : > { %1182 = verf.f32 %v380_v21  ;;  %v374_v40 = vmul.f32 0.5, %v1043_v15  ;;  %v375_v44 = vmul.f32 0.5, %v1044_v16  ;;  %v376_v48 = vmul.f32 0.5, %v1047_v20  ;;  %p1213_p0 = pneg %p1212_p13 }
  0x1f   : > { %1184 = verf.f32 %v381_v22  ;;  %v377_v53 = vmul.f32 0.5, %v1048_v23  ;;  %1102 = vmatpush3.bf16.msra.mxu0 %v1172_v2 }
  0x20   : > { %1082 = vmatmul.mubr.msk.bf16.gmra.mxu1 %vm447_vm1, %v1168_v17  ;;  %1186 = verf.f32 %v382_v24  ;;  %1103 = vmatprep.subr.bf16.mxu0 %v1173_v3  ;;  %v1017_v17 = vld [vmem:[%s1506_s5] ss:$0 sm:$0xff] }
  0x21   : > { %1188 = verf.f32 %v383_v25 }
  0x22   : > { %1190 = verf.f32 %v384_v26 }
  0x23   : > { %1192 = verf.f32 %v385_v27  ;;  %1104 = vmatpush3.bf16.msra.mxu0 %v1173_v3 }
  0x24   : > { %1105 = vmatprep.subr.bf16.mxu0 %v1174_v4 }
  0x27   : > { %1106 = vmatpush3.bf16.msra.mxu0 %v1174_v4 }
  0x28   : > { %1107 = vmatprep.subr.bf16.mxu0 %v1175_v5 }
  0x29   : > { %v1179_v29 = vpop.eup %1178 }
  0x2a   : > { %v1181_v31 = vpop.eup %1180  ;;  %v394_v32 = vadd.f32 1.0, %v1179_v29 }
  0x2b   : > { %v1183_v34 = vpop.eup %1182  ;;  %v395_v35 = vadd.f32 1.0, %v1181_v31  ;;  %1108 = vmatpush3.bf16.msra.mxu0 %v1175_v5 }
  0x2c   : > { %v1185_v37 = vpop.eup %1184  ;;  %v402_v38 = vmul.f32 %v394_v32, %v370_v28  ;;  %v396_v39 = vadd.f32 1.0, %v1183_v34  ;;  %1109 = vmatprep.subr.bf16.mxu0 %v1176_v6 }
  0x2d   : > { %v1187_v41 = vpop.eup %1186  ;;  %v403_v42 = vmul.f32 %v395_v35, %v371_v30  ;;  %v397_v43 = vadd.f32 1.0, %v1185_v37 }
  0x2e   : > { %v1189_v45 = vpop.eup %1188  ;;  %v404_v46 = vmul.f32 %v396_v39, %v372_v33  ;;  %v398_v47 = vadd.f32 1.0, %v1187_v41 }
  0x2f   : > { %v1191_v49 = vpop.eup %1190  ;;  %v410_v50 = vpack.c.bf16 %v403_v42, %v402_v38  ;;  %v405_v51 = vmul.f32 %v397_v43, %v373_v36  ;;  %v399_v52 = vadd.f32 1.0, %v1189_v45  ;;  %1110 = vmatpush3.bf16.msra.mxu0 %v1176_v6 }
  0x30   : > { %v1193_v54 = vpop.eup %1192  ;;  %v406_v55 = vmul.f32 %v398_v47, %v374_v40  ;;  %v400_v56 = vadd.f32 1.0, %v1191_v49  ;;  %1111 = vmatprep.subr.bf16.mxu0 %v1177_v7 }
  0x31   : > { %1089 = vmatprep.mubr.msk.bf16.mxu1 %vm541_vm2, %v410_v50  ;;  %v411_v57 = vpack.c.bf16 %v405_v51, %v404_v46  ;;  %v407_v58 = vmul.f32 %v399_v52, %v375_v44  ;;  %v401_v59 = vadd.f32 1.0, %v1193_v54 }
  0x32   : > { %v408_v61 = vmul.f32 %v400_v56, %v376_v48 }
  0x33   : > { %1090 = vmatmul.mubr.msk.bf16.vlgmr.msra.gmra.mxu1 %vm541_vm2, %v411_v57  ;;  %v412_v60 = vpack.c.bf16 %v407_v58, %v406_v55  ;;  %v409_v62 = vmul.f32 %v401_v59, %v377_v53  ;;  %1112 = vmatpush3.bf16.msra.mxu0 %v1177_v7 }
  0x35   : > { %1093 = vmatprep.mubr.msk.bf16.mxu1 %vm541_vm2, %v412_v60  ;;  %v413_v63 = vpack.c.bf16 %v409_v62, %v408_v61 }
  0x3b   : > { %1094 = vmatmul.mubr.msk.bf16.gmra.mxu1 %vm541_vm2, %v413_v63 }
  0xd8   : > { %v1079_v8 = vpop.f32.mrf.mxu1 }
  0xda   : > { %v498_v9 = vpop.f32.mrf.mxu1 }
  0xdc   : > { %v1080_v10 = vpop.f32.mrf.mxu1 }
  0xde   : > { %v501_v11 = vpop.f32.mrf.mxu1 }
  0xe0   : > { %v1083_v12 = vpop.f32.mrf.mxu1 }
  0xe2   : > { %v514_v13 = vpop.f32.mrf.mxu1 }
  0xe4   : > { %v1084_v14 = vpop.f32.mrf.mxu1 }
  0xe6   : > { %v517_v15 = vpop.f32.mrf.mxu1 }
  0xf3   : > { %v1091_v16 = vpop.f32.mrf.mxu1 }
  0xf4   : > { %v597_v18 = vadd.f32 %v1091_v16, %v1079_v8 }
  0xf5   : > { %v588_v19 = vpop.f32.mrf.mxu1 }
  0xf6   : > { %v628_v20 = vadd.f32 %v1017_v17, %v597_v18  ;;  %v589_v21 = vadd.f32 %v588_v19, %v498_v9 }
  0xf7   : > { %v1092_v22 = vpop.f32.mrf.mxu1 }
  0xf8   : > { %v626_v23 = vadd.f32 %v1017_v17, %v589_v21  ;;  %v600_v24 = vadd.f32 %v1092_v22, %v1080_v10  ;;  %v644_v25 = vmul.f32 0.70710677, %v628_v20  ;;  %v636_v60 = vmul.f32 0.5, %v628_v20  ;;  %v814_v21 = vld [vmem:[%s348_s10] sm:$0xff] }
  0xf9   : > { %v591_v26 = vpop.f32.mrf.mxu1  ;;  %vm816_vm3 = vnez %v814_v21  ;;  %v1272_v22 = vmov 0  }
  0xfa   : > { %v642_v27 = vmul.f32 0.70710677, %v626_v23  ;;  %v629_v28 = vadd.f32 %v1017_v17, %v600_v24  ;;  %v592_v29 = vadd.f32 %v591_v26, %v501_v11  ;;  %v634_v57 = vmul.f32 0.5, %v626_v23  ;;  %v815_v24 = vld [vmem:[%s348_s10 + $0x8] sm:$0xff]  ;;  %s1214_s10 = sshll.u32 %s1273_s26, 4  ;;  %s1215_s10 = int_to_ptr.vmem [resolvable:$false] %s1214_s10 }
  0xfb   : > { %v1095_v30 = vpop.f32.mrf.mxu1  ;;  %v818_v23 = vsel %vm816_vm3, 16843009, %v1272_v22  ;;  %vm817_vm4 = vnez %v815_v24  ;;  %s1216_s13 = scalar_lea.vmem %s1215_s10, 2048  ;;  %p1217_p1 = scmp.lt.s32.totalorder %s1455_s21, %s1215_s10 }
  0xfc   : > { %1194 = verf.f32 %v642_v27  ;;  %v645_v31 = vmul.f32 0.70710677, %v629_v28  ;;  %v627_v32 = vadd.f32 %v1017_v17, %v592_v29  ;;  %v613_v33 = vadd.f32 %v1095_v30, %v1083_v12  ;;  %p1218_p2 = scmp.lt.s32.totalorder %s1216_s13, %s1210_s25 }
  0xfd   : > { %1196 = verf.f32 %v644_v25  ;;  %v604_v34 = vpop.f32.mrf.mxu1  ;;  %v637_v55 = vmul.f32 0.5, %v629_v28  ;;  %v822_v25 = vunpack.c.2.s8 %v818_v23  ;;  %v820_v26 = vunpack.c.0.s8 %v818_v23 }
  0xfe   : > { %1198 = verf.f32 %v645_v31  ;;  %v643_v35 = vmul.f32 0.70710677, %v627_v32  ;;  %v605_v36 = vadd.f32 %v604_v34, %v514_v13  ;;  %v632_v37 = vadd.f32 %v1017_v17, %v613_v33  ;;  %p1219_p3 = por %p1218_p2, %p1217_p1 }
  0xff   : > { %v1096_v38 = vpop.f32.mrf.mxu1  ;;  %v635_v58 = vmul.f32 0.5, %v627_v32  ;;  %v832_v27 = vpack.c.b16 %v822_v25, %v822_v25  ;;  %v823_v28 = vunpack.c.3.s8 %v818_v23  ;;  %v819_v29 = vsel %vm817_vm4, 16843009, %v1272_v22 }
 0x100   : > { %1200 = verf.f32 %v643_v35  ;;  %v630_v39 = vadd.f32 %v1017_v17, %v605_v36  ;;  %v616_v40 = vadd.f32 %v1096_v38, %v1084_v14  ;;  %v648_v41 = vmul.f32 0.70710677, %v632_v37  ;;  %p1220_p4 = pnand %p1219_p3, %p1213_p0 }
 0x101   : > { %v607_v42 = vpop.f32.mrf.mxu1  ;;  %v640_v14 = vmul.f32 0.5, %v632_v37  ;;  %v828_v30 = vpack.c.b16 %v820_v26, %v820_v26  ;;  %v821_v31 = vunpack.c.1.s8 %v818_v23  ;;  %v833_v32 = vpack.c.b8 %v832_v27, %v832_v27 }
 0x102   : > { %v646_v43 = vmul.f32 0.70710677, %v630_v39  ;;  %v633_v44 = vadd.f32 %v1017_v17, %v616_v40  ;;  %v608_v45 = vadd.f32 %v607_v42, %v517_v15  ;;  %v638_v11 = vmul.f32 0.5, %v630_v39 }
 0x103   : > { %v834_v33 = vpack.c.b16 %v823_v28, %v823_v28  ;;  %v826_v34 = vunpack.c.2.s8 %v819_v29  ;;  %v829_v35 = vpack.c.b8 %v828_v30, %v828_v30  ;;  %v830_v36 = vpack.c.b16 %v821_v31, %v821_v31 }
 0x104   : > { %1202 = verf.f32 %v646_v43  ;;  %v649_v46 = vmul.f32 0.70710677, %v633_v44  ;;  %v631_v47 = vadd.f32 %v1017_v17, %v608_v45  ;;  %v641_v9 = vmul.f32 0.5, %v633_v44 }
 0x105   : > { %1204 = verf.f32 %v648_v41  ;;  %v824_v37 = vunpack.c.0.s8 %v819_v29  ;;  %vm846_vm5 = vnez %v833_v32  ;;  %v835_v38 = vpack.c.b8 %v834_v33, %v834_v33 }
 0x106   : > { %1206 = verf.f32 %v649_v46  ;;  %v647_v48 = vmul.f32 0.70710677, %v631_v47  ;;  %v639_v12 = vmul.f32 0.5, %v631_v47  ;;  %v840_v39 = vpack.c.b16 %v826_v34, %v826_v34 }
 0x107   : > { %v827_v40 = vunpack.c.3.s8 %v819_v29  ;;  %vm844_vm6 = vnez %v829_v35  ;;  %v831_v41 = vpack.c.b8 %v830_v36, %v830_v36  ;;  %v836_v42 = vpack.c.b16 %v824_v37, %v824_v37 }
 0x108   : > { %1208 = verf.f32 %v647_v48  ;;  %v825_v43 = vunpack.c.1.s8 %v819_v29  ;;  %v854_v44 = vsel %vm846_vm5, 16843009, %v1272_v22  ;;  %vm847_vm7 = vnez %v835_v38 }
 0x109   : > { %v1195_v49 = vpop.eup %1194  ;;  %v841_v45 = vpack.c.b8 %v840_v39, %v840_v39  ;;  %v842_v46 = vpack.c.b16 %v827_v40, %v827_v40  ;;  %v852_v47 = vsel %vm844_vm6, 16843009, %v1272_v22  ;;  %v862_v48 = vunpack.c.0.s8 %v854_v44 }
 0x10a   : > { %v1197_v50 = vpop.eup %1196  ;;  %v658_v52 = vadd.f32 1.0, %v1195_v49  ;;  %vm845_vm8 = vnez %v831_v41  ;;  %v837_v49 = vpack.c.b8 %v836_v42, %v836_v42 }
 0x10b   : > { %v1199_v51 = vpop.eup %1198  ;;  %v660_v56 = vadd.f32 1.0, %v1197_v50  ;;  %v838_v50 = vpack.c.b16 %v825_v43, %v825_v43  ;;  %vm850_vm9 = vnez %v841_v45  ;;  %vm870_vm10 = vcmp.ne.s32.totalorder %v862_v48, 0 }
 0x10c   : > { %v661_v53 = vadd.f32 1.0, %v1199_v51  ;;  %v666_v62 = vmul.f32 %v658_v52, %v634_v57  ;;  %v855_v51 = vsel %vm847_vm7, 16843009, %v1272_v22  ;;  %v1018_v52 = vld [vmem:[%s1508_s7] ss:$0 sm:$0xff]  ;;  %vm848_vm11 = vnez %v837_v49 }
 0x10d   : > { %v1201_v54 = vpop.eup %1200  ;;  %v668_v1 = vmul.f32 %v660_v56, %v636_v60  ;;  %v863_v57 = vunpack.c.0.s8 %v855_v51  ;;  %v858_v60 = vsel %vm850_vm9, 16843009, %v1272_v22 }
 0x10e   : > { %v659_v59 = vadd.f32 1.0, %v1201_v54  ;;  %v669_v61 = vmul.f32 %v661_v53, %v637_v55  ;;  %v860_v53 = vunpack.c.0.s8 %v852_v47  ;;  %v843_v54 = vpack.c.b8 %v842_v46, %v842_v46 }
 0x10f   : > { %v853_v55 = vsel %vm845_vm8, 16843009, %v1272_v22  ;;  %vm871_vm14 = vcmp.ne.s32.totalorder %v863_v57, 0 }
 0x110   : > { %v667_v63 = vmul.f32 %v659_v59, %v635_v58  ;;  %v675_v5 = vpack.c.bf16 %v669_v61, %v668_v1  ;;  %v839_v58 = vpack.c.b8 %v838_v50, %v838_v50  ;;  %vm868_vm12 = vcmp.ne.s32.totalorder %v860_v53, 0 }
 0x111   : > { %v1203_v0 = vpop.eup %1202  ;;  %vm851_vm13 = vnez %v843_v54  ;;  %v856_v1 = vsel %vm848_vm11, 16843009, %v1272_v22 }
 0x112   : > { %v1205_v2 = vpop.eup %1204  ;;  %v674_v3 = vpack.c.bf16 %v667_v63, %v666_v62  ;;  %v662_v6 = vadd.f32 1.0, %v1203_v0  ;;  %v861_v62 = vunpack.c.0.s8 %v853_v55  ;;  %vm849_vm15 = vnez %v839_v58 }
 0x113   : > { %v1207_v4 = vpop.eup %1206  ;;  %v664_v10 = vadd.f32 1.0, %v1205_v2 }
 0x114   : > { %1113 = vmatprep.mubr.bf16.mxu0 %v674_v3  ;;  %v665_v7 = vadd.f32 1.0, %v1207_v4  ;;  %v670_v16 = vmul.f32 %v662_v6, %v638_v11  ;;  %v866_v3 = vunpack.c.0.s8 %v858_v60  ;;  %v859_v6 = vsel %vm851_vm13, 16843009, %v1272_v22 }
 0x115   : > { %v1209_v8 = vpop.eup %1208  ;;  %1114 = vmatmul.mubr.bf16.vlgmr.msra.gmra.mxu0 %v675_v5  ;;  %v672_v18 = vmul.f32 %v664_v10, %v640_v14  ;;  %vm869_vm0 = vcmp.ne.s32.totalorder %v861_v62, 0  ;;  %v857_v11 = vsel %vm849_vm15, 16843009, %v1272_v22 }
 0x116   : > { %v663_v13 = vadd.f32 1.0, %v1209_v8  ;;  %v673_v15 = vmul.f32 %v665_v7, %v641_v9  ;;  %v864_v8 = vunpack.c.0.s8 %v856_v1  ;;  %vm874_vm1 = vcmp.ne.s32.totalorder %v866_v3, 0 }
 0x118   : > { %v671_v17 = vmul.f32 %v663_v13, %v639_v12  ;;  %v677_v20 = vpack.c.bf16 %v673_v15, %v672_v18  ;;  %v867_v13 = vunpack.c.0.s8 %v859_v6  ;;  %vm872_vm2 = vcmp.ne.s32.totalorder %v864_v8, 0 }
 0x11a   : > { %v676_v19 = vpack.c.bf16 %v671_v17, %v670_v16  ;;  %v865_v17 = vunpack.c.0.s8 %v857_v11  ;;  %vm875_vm3 = vcmp.ne.s32.totalorder %v867_v13, 0 }
 0x11c   : > { %1117 = vmatprep.mubr.bf16.mxu0 %v676_v19  ;;  %vm873_vm4 = vcmp.ne.s32.totalorder %v865_v17, 0 }
 0x11d   : > { %1118 = vmatmul.mubr.bf16.gmra.mxu0 %v677_v20 }
 0x1d5   : > { %v1115_v56 = vpop.f32.mrf.mxu0 }
 0x1d6   : > { %v792_v59 = vadd.f32 %v1115_v56, %v1018_v52 }
 0x1d7   : > { %v783_v61 = vpop.f32.mrf.mxu0 }
 0x1d8   : > { %v878_v63 = vsel %vm870_vm10, -10000.0, %v792_v59  ;;  %v784_v0 = vadd.f32 %v1018_v52, %v783_v61 }
 0x1d9   : > { %886 = vst [vmem:[%s1438_s19 + $0x10] sm:$0xff] %v878_v63  ;;  %v1116_v2 = vpop.f32.mrf.mxu0 }
 0x1da   : > { %v876_v4 = vsel %vm868_vm12, -10000.0, %v784_v0  ;;  %v795_v5 = vadd.f32 %v1116_v2, %v1018_v52 }
 0x1db   : > { %884 = vst [vmem:[%s1438_s19] sm:$0xff] %v876_v4  ;;  %v786_v7 = vpop.f32.mrf.mxu0 }
 0x1dc   : > { %v879_v9 = vsel %vm871_vm14, -10000.0, %v795_v5  ;;  %v787_v10 = vadd.f32 %v1018_v52, %v786_v7 }
 0x1dd   : > { %887 = vst [vmem:[%s1438_s19 + $0x18] sm:$0xff] %v879_v9  ;;  %v1119_v12 = vpop.f32.mrf.mxu0 }
 0x1de   : > { %v877_v14 = vsel %vm869_vm0, -10000.0, %v787_v10  ;;  %v808_v15 = vadd.f32 %v1119_v12, %v1018_v52 }
 0x1df   : > { %885 = vst [vmem:[%s1438_s19 + $0x8] sm:$0xff] %v877_v14  ;;  %v799_v16 = vpop.f32.mrf.mxu0 }
 0x1e0   : > { %v882_v18 = vsel %vm874_vm1, -10000.0, %v808_v15  ;;  %v800_v19 = vadd.f32 %v1018_v52, %v799_v16 }
 0x1e1   : > { %890 = vst [vmem:[%s1438_s19 + $0x30] sm:$0xff] %v882_v18  ;;  %v1120_v20 = vpop.f32.mrf.mxu0 }
 0x1e2   : > { %v880_v21 = vsel %vm872_vm2, -10000.0, %v800_v19  ;;  %v811_v22 = vadd.f32 %v1120_v20, %v1018_v52 }
 0x1e3   : > { %888 = vst [vmem:[%s1438_s19 + $0x20] sm:$0xff] %v880_v21  ;;  %v802_v23 = vpop.f32.mrf.mxu0 }
 0x1e4   : > { %v883_v24 = vsel %vm875_vm3, -10000.0, %v811_v22  ;;  %v803_v25 = vadd.f32 %v1018_v52, %v802_v23 }
 0x1e5   : > { %891 = vst [vmem:[%s1438_s19 + $0x38] sm:$0xff] %v883_v24 }
 0x1e6   : > { %v881_v26 = vsel %vm873_vm4, -10000.0, %v803_v25 }
 0x1e7   : > { %889 = vst [vmem:[%s1438_s19 + $0x28] sm:$0xff] %v881_v26 }
 0x1e8   : > { %1223 = shalt.err (!%p1220_p4)
}
 0x1e9   : > { %s1224_s12 = scalar_lea.hbm %s1453_s24, 1024  ;;  %s1228_s19 = scalar_lea.hbm %s1509_s8, 2048 }
 0x1ea   : > { %p1225_p7 = scmp.ne.s32.totalorder %s1453_s24, %s1224_s12  ;;  %p1229_p10 = scmp.lt.s32.totalorder %s1453_s24, %s1509_s8 }
 0x1eb   : > { %p1230_p11 = scmp.lt.s32.totalorder %s1228_s19, %s1224_s12 }
 0x1ec   : > { %p1226_p8 = pnand %p1225_p7, %p1359_p5 }
 0x1ed   : > { %p1231_p12 = por %p1230_p11, %p1229_p10 }
 0x1ee   : > { %p1227_p9 = pneg %p1226_p8 }
 0x1f0   : > { %p1232_p13 = pnand %p1231_p12, %p1227_p9 }
 0x1f2   : > { %1235 = shalt.err (!%p1232_p13)
}
 0x1f3   : > { %s1274_s23 = smov 128   ;;  %s1275_s25 = smov 8  }
 0x1f4   : > { %1122 = dma.vmem_to_hbm [thread:$0]  (%p1359_p5), %s1455_s21, 1024, %s1453_s24, %s1461_s9, %s1274_s23, %s1274_s23, %s1275_s25  }
 0x1f5 PF: > { %p1128_p0 = scmp.ge.s32.totalorder %s1270_s30, 2  ;;  %s921_s26 = sand.u32 1, %s1258_s27  }
 0x1f6   : > { %s922_s10 = scalar_lea.sflag [#allocation3], %s921_s26 }
 0x1f7   : > { %p1125_p1 = pnand %p1128_p0, %p1363_p6 }
 0x1f9   : > { %p1126_p2 = pneg %p1125_p1 }
 0x1fb   : > { %1253 = dma.done.wait (%p1126_p2), %s922_s10, 1024  }
 0x1fc   : > { %1255 = vsyncadd (%p1126_p2), %s922_s10, 4294966272  ;;  %p18_p3 = scmp.ge.s32.totalorder %s1346_s11, 4   ;;  %s1512_s27 = smov %s1262_s28 }
 0x1fd   : > { %s1513_s28 = smov %s1266_s29  ;;  %s1514_s29 = smov %s1357_s14 }
 0x1fe   : > { %s1515_s30 = smov %s1346_s11  ;;  %20 = sbr.rel (!%p18_p3) target bundleno = 3 (0x3), region = 93 }
 0x203   :  { %927 = vsyncpa [#allocation3], 1 }
 0x204   :  { %929 = vsyncpa [#allocation3 + $0x1], 1 }

</bundles_post_ra>
